<compile_context>
chip_gen: v7x
topology: tpu7x:2x2x1
jax: 0.10.0
libtpu: 0.0.40
codegen_flags: <defaults>
</compile_context>

<pallas_src>
import functools

import jax
import jax.numpy as jnp
from jax.experimental import pallas as pl
from jax.experimental.pallas import tpu as pltpu


def _nsc_loss_kernel(x_ref, seq_ref, w_ref, num_ref, lp_acc_ref,
                     *, compute_f32, valid_b):
    # x_ref:      (Bt, T, Vt) bf16/f32  log-prob tile
    # seq_ref:    (Bt, T)     i32       sampled tokens (0 == pad), hoisted over v
    # w_ref:      (Bt, T)     f32       fused weight = shifted_mask * reward
    # num_ref:    (1, 1, 1)   f32       per-B-tile partial numerator (resident)
    # lp_acc_ref: (Bt, T)     f32       scratch: gathered log-prob, accumulated over V tiles
    v = pl.program_id(1)
    nv = pl.num_programs(1)
    b_t, t, v_t = x_ref.shape

    @pl.when(v == 0)
    def _init():
        lp_acc_ref[...] = jnp.zeros_like(lp_acc_ref)

    # lane-only vocab index for this V tile (no (Bt,T,Vt) int32 iota materialized)
    vidx = jax.lax.broadcasted_iota(jnp.int32, (1, 1, v_t), 2) + v * v_t
    match = vidx == seq_ref[...][:, :, None]                  # (Bt, T, Vt) bool

    x = x_ref[...]
    if compute_f32:                                           # v5e / f32-storage path
        x = x.astype(jnp.float32)
    # select is exact in bf16 too: at most one lane per (b, t) is nonzero, so
    # the lane sum never rounds.  Padded lanes (vidx >= V) never match because
    # seq is clamped to [0, V) in the wrapper.
    lp_part = jnp.sum(jnp.where(match, x, jnp.zeros((), x.dtype)), axis=2)
    lp_acc_ref[...] += lp_part.astype(jnp.float32)            # (Bt, T)

    @pl.when(v == nv - 1)
    def _finalize():
        prod = lp_acc_ref[...] * w_ref[...]                   # (Bt, T)
        if valid_b is not None:
            # ragged B (B not a multiple of 8): drop contributions from the
            # Pallas-padded rows of the last B-tile (select, so any NaN/Inf
            # garbage in those rows cannot propagate).
            rows = (pl.program_id(0) * b_t
                    + jax.lax.broadcasted_iota(jnp.int32, (b_t, t), 0))
            prod = jnp.where(rows < valid_b, prod, 0.0)
        num_ref[...] = jnp.zeros_like(num_ref[...]) - jnp.sum(prod)


def structure_losses_new_self_critical(inp, seq, scores):
    """JAX wrapper mirroring StructureLosses.forward (loss_type='new_self_critical').

    inp:    (B, T, V) bf16 or f32 log-probs (kept in its storage dtype)
    seq:    (B, T)    int tokens, 0 == padding, values in [0, V)
    scores: (N_img, seq_per_img) f32, the external get_scores(...) result.
            Batch layout contract: row b belongs to image b // seq_per_img,
            sample b % seq_per_img (image-major, sample-minor).
    Returns {'reward': scores, 'loss': scalar}.
    """
    B, T, V = inp.shape
    n_img, n = scores.shape
    assert B == n_img * n, "batch must equal n_img * seq_per_img"
    assert n > 1, "new_self_critical needs seq_per_img > 1 (baseline divides by n-1)"

    # guard bad token ids: an id >= V would otherwise match garbage padded lanes
    seq = jnp.clip(seq.astype(jnp.int32), 0, V - 1)

    # ---- tiny O(B*T)/O(B*n) prep (glue; keeps the streamed inner loop lean) --
    mask = (seq > 0).astype(jnp.float32)
    mask = jnp.concatenate(
        [jnp.ones((B, 1), jnp.float32), mask[:, :-1]], axis=1)            # (B,T)
    den = jnp.sum(mask)                                                   # scalar (XLA)
    scores_f = scores.astype(jnp.float32)
    baseline = (scores_f.sum(1, keepdims=True) - scores_f) / jnp.float32(n - 1)
    reward = (scores_f - baseline).reshape(-1, 1)                         # (B,1)
    w = mask * reward                                                     # (B,T)

    # ---- device-aware tiling -------------------------------------------------
    itemsize = jnp.dtype(inp.dtype).itemsize
    vmem_cap = 64 * 1024 * 1024                       # conservative fallback (v7x-safe)
    try:
        vmem_cap = int(pltpu.get_tpu_info().vmem_capacity_bytes)
    except Exception:
        pass
    kind = ""
    try:
        kind = jax.devices()[0].device_kind.lower()
    except Exception:
        pass
    small_vmem = vmem_cap < 100 * 1024 * 1024         # v7x: 64 MiB per TensorCore
    vmem_limit = (52 if small_vmem else 100) * 1024 * 1024
    budget = int(0.65 * vmem_limit)                   # for the double-buffered x tile

    # bf16 VALU exists on v6e/v7x; on v5e/older keep the f32 path (HBM-bound there)
    compute_f32 = (inp.dtype == jnp.float32
                   or "v2" in kind or "v3" in kind or "v4" in kind or "v5" in kind)

    B_pad = -(-B // 8) * 8
    V_pad = -(-V // 128) * 128
    min_nb = 2 if (small_vmem and B_pad >= 16) else 1  # feed both v7x TensorCores

    def x_tile_bytes(bt, vt):                          # double-buffered input tile
        return 2 * bt * T * vt * itemsize

    # prefer nv == 1: whole vocab streamed per B-tile -> one big DMA per step
    b_t, v_t = 0, 0
    cands = [bt for bt in range(8, B_pad + 1, 8)
             if B_pad % bt == 0 and B_pad // bt >= min_nb]
    for bt in sorted(cands, reverse=True):
        if x_tile_bytes(bt, V_pad) <= budget:
            b_t, v_t = bt, V_pad
            break
    if b_t == 0:
        # vocab too large even for an 8-row tile: tile V as well (lane-aligned)
        b_t = 8
        v_t = max(128, (budget // (2 * b_t * T * itemsize)) // 128 * 128)
        v_t = min(v_t, V_pad)
    nb = B_pad // b_t
    nv = -(-V_pad // v_t)

    # ragged B: pad only the tiny (B,T) arrays; the big inp stays unpadded and
    # the kernel masks the Pallas-padded rows of its last B-tile.
    if B_pad != B:
        seq_in = jnp.pad(seq, ((0, B_pad - B), (0, 0)))
        w_in = jnp.pad(w, ((0, B_pad - B), (0, 0)))
        valid_b = B
    else:
        seq_in, w_in, valid_b = seq, w, None

    bytes_accessed = int(inp.size * itemsize + seq_in.size * 4
                         + w_in.size * 4 + nb * 4)

    kernel = functools.partial(_nsc_loss_kernel,
                               compute_f32=compute_f32, valid_b=valid_b)

    num_parts = pl.pallas_call(
        kernel,
        out_shape=jax.ShapeDtypeStruct((nb, 1, 1), jnp.float32),
        grid=(nb, nv),
        in_specs=[
            pl.BlockSpec((b_t, T, v_t), lambda b, v: (b, 0, v)),
            pl.BlockSpec((b_t, T), lambda b, v: (b, 0)),   # hoisted over v
            pl.BlockSpec((b_t, T), lambda b, v: (b, 0)),   # hoisted over v
        ],
        out_specs=pl.BlockSpec((1, 1, 1), lambda b, v: (b, 0, 0)),
        scratch_shapes=[pltpu.VMEM((b_t, T), jnp.float32)],
        compiler_params=pltpu.CompilerParams(
            dimension_semantics=("parallel", "arbitrary"),
            vmem_limit_bytes=vmem_limit),
        cost_estimate=pl.CostEstimate(
            flops=3 * B * T * V, transcendentals=0,
            bytes_accessed=bytes_accessed),
    )(inp, seq_in, w_in)

    loss = jnp.sum(num_parts) / den
    return {"reward": scores, "loss": loss}


def _reference_loss(inp, seq, scores):
    """Pure-JAX reference of the 'new_self_critical' branch."""
    lp = jnp.take_along_axis(
        inp.astype(jnp.float32), seq[:, :, None].astype(jnp.int32), axis=2)[:, :, 0]
    mask = (seq > 0).astype(jnp.float32)
    mask = jnp.concatenate(
        [jnp.ones((mask.shape[0], 1), jnp.float32), mask[:, :-1]], axis=1)
    n = scores.shape[1]
    sc = scores.astype(jnp.float32)
    baseline = (sc.sum(1, keepdims=True) - sc) / (n - 1)
    adj = (sc - baseline).reshape(-1, 1)
    out = -lp * mask * adj
    return out.sum() / mask.sum()


if __name__ == "__main__":
    # opt: structure_loss_type='new_self_critical', train_sample_n=4,
    #      entropy_reward_weight=0
    N_IMG, N_SAMPLES = 4, 4
    B = N_IMG * N_SAMPLES          # 16
    T, V = 16, 512

    key = jax.random.PRNGKey(0)
    k1, k2, k3 = jax.random.split(key, 3)

    logits = jax.random.normal(k1, (B, T, V), dtype=jnp.float32)
    # bf16 storage: halves HBM traffic for the only large tensor
    inp = jax.nn.log_softmax(logits, axis=2).astype(jnp.bfloat16)

    seq = jax.random.randint(k2, (B, T), 1, V, dtype=jnp.int32)
    # introduce padding (token 0) to exercise the shifted-mask path
    seq = seq.at[0, 10:].set(0)
    seq = seq.at[3, 12:].set(0)
    seq = seq.at[9, 6:].set(0)
    seq = seq.at[14, 1:].set(0)

    scores = jax.random.uniform(k3, (N_IMG, N_SAMPLES), dtype=jnp.float32)

    out = structure_losses_new_self_critical(inp, seq, scores)
    loss = jax.block_until_ready(out["loss"])
    ref = jax.block_until_ready(_reference_loss(inp, seq, scores))

    assert jnp.allclose(loss, ref, atol=1e-5, rtol=1e-4), (loss, ref)
    print("KERNEL_OK")
</pallas_src>

<mosaic_0001>
module attributes {stable_mosaic.version = 11 : i64} {
  func.func @_nsc_loss_kernel(%arg0: i32, %arg1: i32, %arg2: memref<8x16x512xbf16, #tpu.memory_space<vmem>>, %arg3: memref<8x16xi32, #tpu.memory_space<vmem>>, %arg4: memref<8x16xf32, #tpu.memory_space<vmem>>, %arg5: memref<1x1x1xf32, #tpu.memory_space<vmem>>, %arg6: memref<8x16xf32, #tpu.memory_space<vmem>>) attributes {dimension_semantics = [#tpu.dimension_semantics<parallel>, #tpu.dimension_semantics<arbitrary>], iteration_bounds = array<i64: 2, 1>, scalar_prefetch = 0 : i64, scratch_operands = 1 : i64, tpu.core_type = #tpu.core_type<tc>, window_params = [{transform_indices = @transform_0, window_bounds = array<i64: 8, 16, 512>}, {transform_indices = @transform_1, window_bounds = array<i64: 8, 16>}, {transform_indices = @transform_2, window_bounds = array<i64: 8, 16>}, {transform_indices = @transform_3, window_bounds = array<i64: 1, 1, 1>}]} {
    %c0_i32 = arith.constant 0 : i32
    %0 = arith.cmpi eq, %arg1, %c0_i32 : i32
    %1 = arith.extui %0 : i1 to i32
    %c0_i32_0 = arith.constant 0 : i32
    %2 = arith.cmpi ne, %1, %c0_i32_0 : i32
    scf.if %2 {
      %cst_12 = arith.constant 0.000000e+00 : f32
      %25 = vector.broadcast %cst_12 : f32 to vector<8x16xf32>
      %c0_13 = arith.constant 0 : index
      %c0_14 = arith.constant 0 : index
      %26 = vector.load %arg6[%c0_13, %c0_14] : memref<8x16xf32, #tpu.memory_space<vmem>>, vector<8x16xf32>
      tpu.vector_store %arg6[%c0_13, %c0_14], %25 {strides = array<i32>} : memref<8x16xf32, #tpu.memory_space<vmem>>, vector<8x16xf32>,
    } else {
    }
    %3 = tpu.iota {dimensions = array<i32: 2>} : vector<1x1x512xi32>
    %c512_i32 = arith.constant 512 : i32
    %4 = arith.muli %arg1, %c512_i32 : i32
    %5 = vector.broadcast %4 : i32 to vector<1x1x512xi32>
    %6 = arith.addi %3, %5 : vector<1x1x512xi32>
    %c0 = arith.constant 0 : index
    %c0_1 = arith.constant 0 : index
    %7 = vector.load %arg3[%c0, %c0_1] : memref<8x16xi32, #tpu.memory_space<vmem>>, vector<8x16xi32>
    %8 = vector.shape_cast %7 : vector<8x16xi32> to vector<8x16x1xi32>
    %9 = vector.broadcast %6 : vector<1x1x512xi32> to vector<8x16x512xi32>
    %10 = vector.broadcast %8 : vector<8x16x1xi32> to vector<8x16x512xi32>
    %11 = arith.cmpi eq, %9, %10 : vector<8x16x512xi32>
    %c0_2 = arith.constant 0 : index
    %c0_3 = arith.constant 0 : index
    %c0_4 = arith.constant 0 : index
    %12 = vector.load %arg2[%c0_2, %c0_3, %c0_4] : memref<8x16x512xbf16, #tpu.memory_space<vmem>>, vector<8x16x512xbf16>
    %cst = arith.constant 0.000000e+00 : bf16
    %13 = vector.broadcast %cst : bf16 to vector<8x16x512xbf16>
    %14 = arith.select %11, %12, %13 : vector<8x16x512xi1>, vector<8x16x512xbf16>
    %15 = arith.extf %14 : vector<8x16x512xbf16> to vector<8x16x512xf32>
    %cst_5 = arith.constant dense<0.000000e+00> : vector<8x16xf32>
    %16 = vector.multi_reduction <add>, %15, %cst_5 [2] : vector<8x16x512xf32> to vector<8x16xf32>
    %17 = arith.truncf %16 : vector<8x16xf32> to vector<8x16xbf16>
    %c0_6 = arith.constant 0 : index
    %c0_7 = arith.constant 0 : index
    %18 = vector.load %arg6[%c0_6, %c0_7] : memref<8x16xf32, #tpu.memory_space<vmem>>, vector<8x16xf32>
    %19 = arith.extf %17 : vector<8x16xbf16> to vector<8x16xf32>
    %20 = arith.addf %18, %19 : vector<8x16xf32>
    %c0_8 = arith.constant 0 : index
    %c0_9 = arith.constant 0 : index
    %21 = vector.load %arg6[%c0_8, %c0_9] : memref<8x16xf32, #tpu.memory_space<vmem>>, vector<8x16xf32>
    tpu.vector_store %arg6[%c0_8, %c0_9], %20 {strides = array<i32>} : memref<8x16xf32, #tpu.memory_space<vmem>>, vector<8x16xf32>,
    %c0_i32_10 = arith.constant 0 : i32
    %22 = arith.cmpi eq, %arg1, %c0_i32_10 : i32
    %23 = arith.extui %22 : i1 to i32
    %c0_i32_11 = arith.constant 0 : i32
    %24 = arith.cmpi ne, %23, %c0_i32_11 : i32
    scf.if %24 {
      %c0_12 = arith.constant 0 : index
      %c0_13 = arith.constant 0 : index
      %25 = vector.load %arg6[%c0_12, %c0_13] : memref<8x16xf32, #tpu.memory_space<vmem>>, vector<8x16xf32>
      %c0_14 = arith.constant 0 : index
      %c0_15 = arith.constant 0 : index
      %26 = vector.load %arg4[%c0_14, %c0_15] : memref<8x16xf32, #tpu.memory_space<vmem>>, vector<8x16xf32>
      %27 = arith.mulf %25, %26 : vector<8x16xf32>
      %cst_16 = arith.constant 0.000000e+00 : f32
      %28 = vector.broadcast %cst_16 : f32 to vector<1x1x1xf32>
      %29 = vector.shape_cast %27 : vector<8x16xf32> to vector<1x8x16xf32>
      %cst_17 = arith.constant dense<0.000000e+00> : vector<1xf32>
      %30 = vector.multi_reduction <add>, %29, %cst_17 [1, 2] : vector<1x8x16xf32> to vector<1xf32>
      %31 = vector.shape_cast %30 : vector<1xf32> to vector<1x1x1xf32>
      %32 = vector.extract %31[0, 0, 0] : f32 from vector<1x1x1xf32>
      %33 = vector.broadcast %32 : f32 to vector<1x1x1xf32>
      %34 = arith.subf %28, %33 : vector<1x1x1xf32>
      %c0_18 = arith.constant 0 : index
      %c0_19 = arith.constant 0 : index
      %c0_20 = arith.constant 0 : index
      %35 = vector.load %arg5[%c0_18, %c0_19, %c0_20] : memref<1x1x1xf32, #tpu.memory_space<vmem>>, vector<1x1x1xf32>
      tpu.vector_store %arg5[%c0_18, %c0_19, %c0_20], %34 {strides = array<i32>} : memref<1x1x1xf32, #tpu.memory_space<vmem>>, vector<1x1x1xf32>,
    } else {
    }
    return
  }
  func.func @transform_0(%arg0: i32, %arg1: i32) -> (i32, i32, i32) {
    %c0_i32 = arith.constant 0 : i32
    %c0_i32_0 = arith.constant 0 : i32
    return %arg0, %c0_i32, %arg1 : i32, i32, i32
  }
  func.func @transform_1(%arg0: i32, %arg1: i32) -> (i32, i32) {
    %c0_i32 = arith.constant 0 : i32
    %c0_i32_0 = arith.constant 0 : i32
    return %arg0, %c0_i32 : i32, i32
  }
  func.func @transform_2(%arg0: i32, %arg1: i32) -> (i32, i32) {
    %c0_i32 = arith.constant 0 : i32
    %c0_i32_0 = arith.constant 0 : i32
    return %arg0, %c0_i32 : i32, i32
  }
  func.func @transform_3(%arg0: i32, %arg1: i32) -> (i32, i32, i32) {
    %c0_i32 = arith.constant 0 : i32
    %c0_i32_0 = arith.constant 0 : i32
    %c0_i32_1 = arith.constant 0 : i32
    return %arg0, %c0_i32, %c0_i32_0 : i32, i32, i32
  }
}

</mosaic_0001>

<bundles_post_ra>
// kernel: tpu_custom_call.1
= control target key start
LH: loop header
LB: loop body
LE: loop exit
PB: predicated region body
PF: predicated region fallthrough
CT: control target
= control target key end

     0   :  { %8 = vsyncpa [#allocation4], 0  ;;  %s1927_s0 = inlined_call_operand.hbm [shape: bf16[16,16,512], index: 0, kind: input, shape index: {}]   ;;  %s1928_s1 = inlined_call_operand.hbm [shape: s32[16,16], index: 1, kind: input, shape index: {}]   ;;  %s1929_s2 = inlined_call_operand.hbm [shape: f32[16,16], index: 2, kind: input, shape index: {}]   ;;  %s1930_s3 = inlined_call_operand.vmem [shape: f32[2,1,1], index: 3, kind: output, shape index: {}]  }
   0x1   :  { %10 = vsyncpa [#allocation4 + $0x1], 0 }
   0x2   :  { %11 = vsyncpa [#allocation6], 0 }
   0x3   :  { %13 = vsyncpa [#allocation6 + $0x1], 0  ;;  %s1216_s12 = smov 0   ;;  %s1218_s13 = smov 0  }
   0x4   :  { %s1220_s14 = smov 0   ;;  %s1222_s15 = smov 0  }
   0x5   :  { %s1224_s16 = smov 0   ;;  %s1226_s17 = smov 0  }
   0x6 LB: > { %s1932_s18 = sadd.s32 4294967295, %s1188_s17   ;;  %s31_s19 = sadd.s32 1, %s1184_s16  ;;  %s1188_s17 = sphi %s1226_s17, %s19_s17   ;;  %s1184_s16 = sphi %s1224_s16, %s1986_s16   ;;  %s1180_s15 = sphi %s1222_s15, %s1985_s15   ;;  %s1176_s14 = sphi %s1220_s14, %s1984_s14   ;;  %s1172_s13 = sphi %s1218_s13, %s1983_s13   ;;  %s1168_s12 = sphi %s1216_s12, %s1982_s12  }
   0x7   : > { %p33_p0 = scmp.ge.s32.totalorder %s31_s19, 2  ;;  %s40_s20 = sadd.s32 1, %s1176_s14 }
   0x8   : > { %p47_p1 = scmp.ne.s32.totalorder %s1176_s14, %s1172_s13  ;;  %p48_p2 = scmp.eq.s32.totalorder %s1188_s17, 0 }
   0x9   : > { %s1988_s19 = smov (%p33_p0, %s31_s19), 0  ;;  %p53_p4 = scmp.ne.s32.totalorder %s1172_s13, %s1168_s12 }
   0xa   : > { %p49_p3 = por %p48_p2, %p47_p1  ;;  %s35_s21 = ssub.s32 %s1184_s16, %s1988_s19 }
   0xb   : > { %p54_p5 = scmp.eq.s32.totalorder %s1932_s18, 0  ;;  %p38_p6 = scmp.eq.s32.totalorder %s35_s21, 0 }
   0xc   : > { %p992_p8 = scmp.lt.s32.totalorder %s1188_s17, 2  ;;  %s1266_s24 = sand.u32 1, %s1176_s14  }
   0xd   : > { %p1257_p7 = por %p54_p5, %p53_p4  ;;  %s179_s26 = sand.u32 1, %s1188_s17  }
   0xe   : > { %s1263_s23 = scalar_select %p38_p6, %s1176_s14, %s40_s20  }
   0xf   : > { %s1934_s22 = scalar_select %p1257_p7, 1, 0 }
  0x10   : > { %p1268_p9 = pnand %p992_p8, %p49_p3  ;;  %s962_s27 = sshll.u32 %s1266_s24, 3 }
  0x11   : > { %s963_s28 = sshll.u32 %s1184_s16, 7  ;;  %s183_s5 = scalar_lea.vmem [#allocation5], %s962_s27 }
  0x12   : > { %s1935_s25 = scalar_select %p1268_p9, 1, 0 }
  0x13   : > { %s1280_s4 = scalar_lea.hbm %s1928_s1, %s963_s28  ;;  %s190_s6 = sshll.u32 %s183_s5, 4  ;;  %s1284_s6 = int_to_ptr.vmem [resolvable:$true] %s190_s6 }
  0x14   : > { %s1286_s7 = scalar_lea.sflag [#allocation6], %s179_s26  ;;  %s1044_s8 = scalar_lea.hbm %s1280_s4, 128 }
  0x15   : > { %p1045_p10 = scmp.ne.s32.totalorder %s1280_s4, %s1044_s8  ;;  %p1292_p11 = pneg %p1268_p9 }
  0x16   : > { %s1049_s12 = scalar_lea.hbm %s1928_s1, 256  ;;  %p1050_p0 = scmp.lt.u32.totalorder %s1280_s4, %s1928_s1 }
  0x17   : > { %p1047_p12 = pnand %p1292_p11, %p1045_p10  ;;  %p1051_p1 = scmp.lt.u32.totalorder %s1049_s12, %s1044_s8 }
  0x18   : > { %p1053_p3 = scmp.lt.u32.totalorder %s1044_s8, %s1280_s4 }
  0x19   : > { %p1048_p13 = pneg %p1047_p12  ;;  %p1052_p2 = por %p1051_p1, %p1050_p0 }
  0x1b   : > { %p1054_p4 = por %p1053_p3, %p1052_p2 }
  0x1d   : > { %p1055_p5 = pnand %p1054_p4, %p1048_p13 }
  0x1f   : > { %1058 = shalt.err (!%p1055_p5)
}
  0x20   : > { %s1059_s26 = scalar_lea.vmem %s1284_s6, 128  ;;  %s1190_s29 = smov [#allocation5]  }
  0x21   : > { %p1060_p6 = scmp.ne.s32.totalorder %s1284_s6, %s1059_s26  ;;  %s1064_s30 = sshll.u32 %s1190_s29, 4  ;;  %s1065_s30 = int_to_ptr.vmem [resolvable:$false] %s1064_s30 }
  0x22   : > { %s1066_s5 = scalar_lea.vmem %s1065_s30, 256  ;;  %p1067_p12 = scmp.lt.s32.totalorder %s1284_s6, %s1065_s30 }
  0x23   : > { %p1062_p8 = pnand %p1060_p6, %p1292_p11  ;;  %p1068_p7 = scmp.lt.s32.totalorder %s1066_s5, %s1059_s26 }
  0x25   : > { %p1063_p10 = pneg %p1062_p8  ;;  %p1069_p0 = por %p1068_p7, %p1067_p12 }
  0x27   : > { %p1070_p1 = pnand %p1069_p0, %p1063_p10 }
  0x29   : > { %1073 = shalt.err (!%p1070_p1)
}
  0x2a   : > { %988 = dma.hbm_to_vmem [thread:$0]  (!%p1268_p9), %s1280_s4, 128, %s1284_s6, %s1286_s7  }
  0x2b   : > { %s1321_s11 = scalar_lea.hbm %s1929_s2, %s963_s28  ;;  %p966_p7 = scmp.ge.s32.totalorder %s1188_s17, 1 }
  0x2c   : > { %p213_p13 = scmp.lt.s32.totalorder %s1188_s17, 3  ;;  %s958_s20 = sshll.u32 %s1266_s24, 8 }
  0x2d   : > { %s973_s21 = sshll.u32 %s1184_s16, 12  ;;  %s159_s4 = scalar_lea.vmem [#allocation3], %s958_s20 }
  0x2e   : > { %p1325_p2 = pnand %p966_p7, %p213_p13  ;;  %s1334_s30 = scalar_lea.hbm %s1927_s0, %s973_s21 }
  0x2f   : > { %s169_s28 = sshll.u32 %s159_s4, 4  ;;  %s1340_s6 = scalar_lea.vmem [#allocation7], %s962_s27  ;;  %s1336_s28 = int_to_ptr.vmem [resolvable:$true] %s169_s28 }
  0x30   : > { %s1937_s12 = scalar_select %p1325_p2, 1, 0 }
  0x31   : > { %s208_s5 = sshll.u32 %s1340_s6, 4  ;;  %s156_s8 = scalar_lea.sflag [#allocation4], %s1266_s24  ;;  %s209_s5 = int_to_ptr.vmem [resolvable:$true] %s208_s5 }
  0x32   : > { %s1074_s10 = scalar_lea.hbm %s1334_s30, 4096  ;;  %s1079_s29 = scalar_lea.hbm %s1927_s0, 8192 }
  0x33   : > { %p1075_p3 = scmp.ne.s32.totalorder %s1334_s30, %s1074_s10  ;;  %p1080_p6 = scmp.lt.u32.totalorder %s1334_s30, %s1927_s0 }
  0x34   : > { %p1081_p8 = scmp.lt.u32.totalorder %s1079_s29, %s1074_s10  ;;  %p1083_p12 = scmp.lt.u32.totalorder %s1074_s10, %s1334_s30 }
  0x35   : > { %p1077_p4 = pnand %p1075_p3, %p1292_p11 }
  0x36   : > { %p1082_p10 = por %p1081_p8, %p1080_p6 }
  0x37   : > { %p1078_p5 = pneg %p1077_p4 }
  0x38   : > { %p1084_p0 = por %p1083_p12, %p1082_p10 }
  0x3a   : > { %p1085_p1 = pnand %p1084_p0, %p1078_p5 }
  0x3c   : > { %1088 = shalt.err (!%p1085_p1)
}
  0x3d   : > { %s1089_s27 = scalar_lea.vmem %s1336_s28, 4096  ;;  %s1191_s4 = smov [#allocation3]  }
  0x3e   : > { %p1090_p7 = scmp.ne.s32.totalorder %s1336_s28, %s1089_s27  ;;  %s1094_s21 = sshll.u32 %s1191_s4, 4  ;;  %s1095_s21 = int_to_ptr.vmem [resolvable:$false] %s1094_s21 }
  0x3f   : > { %s1096_s18 = scalar_lea.vmem %s1095_s21, 8192  ;;  %p1097_p4 = scmp.lt.s32.totalorder %s1336_s28, %s1095_s21 }
  0x40   : > { %p1092_p13 = pnand %p1090_p7, %p1292_p11  ;;  %p1098_p2 = scmp.lt.s32.totalorder %s1096_s18, %s1089_s27 }
  0x42   : > { %p1093_p3 = pneg %p1092_p13  ;;  %p1099_p6 = por %p1098_p2, %p1097_p4 }
  0x44   : > { %p1100_p8 = pnand %p1099_p6, %p1093_p3 }
  0x46   : > { %1103 = shalt.err (!%p1100_p8)
}
  0x47   : > { %s1192_s10 = smov 256   ;;  %s1193_s26 = smov 16  }
  0x48   : > { %985 = dma.hbm_to_vmem [thread:$0]  (!%p1268_p9), %s1334_s30, 4096, %s1336_s28, %s156_s8, %s1192_s10, %s1192_s10, %s1193_s26  }
  0x49   : > { %s1104_s29 = scalar_lea.hbm %s1321_s11, 128  ;;  %s1109_s4 = scalar_lea.hbm %s1929_s2, 256 }
  0x4a   : > { %p1105_p2 = scmp.ne.s32.totalorder %s1321_s11, %s1104_s29  ;;  %p1110_p12 = scmp.lt.u32.totalorder %s1321_s11, %s1929_s2 }
  0x4b   : > { %p1111_p0 = scmp.lt.u32.totalorder %s1109_s4, %s1104_s29  ;;  %p1113_p7 = scmp.lt.u32.totalorder %s1104_s29, %s1321_s11 }
  0x4c   : > { %p1107_p5 = pnand %p1105_p2, %p1292_p11 }
  0x4d   : > { %p1112_p1 = por %p1111_p0, %p1110_p12 }
  0x4e   : > { %p1108_p10 = pneg %p1107_p5 }
  0x4f   : > { %p1114_p13 = por %p1113_p7, %p1112_p1 }
  0x51   : > { %p1115_p3 = pnand %p1114_p13, %p1108_p10 }
  0x53   : > { %1118 = shalt.err (!%p1115_p3)
}
  0x54   : > { %s1119_s24 = scalar_lea.vmem %s209_s5, 128  ;;  %s1194_s30 = smov [#allocation7]  }
  0x55   : > { %p1120_p4 = scmp.ne.s32.totalorder %s209_s5, %s1119_s24  ;;  %s1124_s28 = sshll.u32 %s1194_s30, 4  ;;  %s1125_s28 = int_to_ptr.vmem [resolvable:$false] %s1124_s28 }
  0x56   : > { %s1126_s6 = scalar_lea.vmem %s1125_s28, 256  ;;  %p1127_p2 = scmp.lt.s32.totalorder %s209_s5, %s1125_s28 }
  0x57   : > { %p1122_p6 = pnand %p1120_p4, %p1292_p11  ;;  %p1128_p5 = scmp.lt.s32.totalorder %s1126_s6, %s1119_s24 }
  0x59   : > { %p1123_p8 = pneg %p1122_p6  ;;  %p1129_p9 = por %p1128_p5, %p1127_p2 }
  0x5b   : > { %p1130_p0 = pnand %p1129_p9, %p1123_p8 }
  0x5d   : > { %1133 = shalt.err (!%p1130_p0)
}
  0x5e   : > { %p1938_p12 = scmp.ne.s32.totalorder %s1935_s25, 0  ;;  %p1939_p10 = scmp.ne.s32.totalorder %s1937_s12, 0 }
  0x5f   : > { %s1390_s9 = sand.u32 (!%p1939_p10), 1, %s1172_s13   ;;  %p1940_p9 = scmp.ne.s32.totalorder (!%p1939_p10), %s1934_s22, 0 }
  0x60   : > { %991 = dma.hbm_to_vmem [thread:$0]  (!%p1938_p12), %s1321_s11, 128, %s209_s5, %s1286_s7  }
  0x61   : > { %217 = sbr.rel (%p1939_p10) target bundleno = 661 (0x295), region = 32  ;;  %s967_s8 = sshll.u32 (!%p1939_p10), %s1390_s9, 8 }
  0x62   : > { %s220_s10 = scalar_lea.sflag (!%p1939_p10), [#allocation4], %s1390_s9  ;;  %s1394_s26 = scalar_lea.vmem (!%p1939_p10), [#allocation3], %s967_s8 }
  0x68   : > { %1159 = dma.done.wait (%p1940_p9), %s220_s10, 4096  }
  0x69   : > { %1161 = vsyncadd (%p1940_p9), %s220_s10, 4294963200  ;;  %s1941_s25 = sadd.s32 4294967295, %s1188_s17   ;;  %s968_s11 = sshll.u32 %s1390_s9, 3 }
  0x6a   : > { %s228_s7 = sand.u32 1, %s1941_s25   ;;  %s232_s5 = scalar_lea.vmem [#allocation5], %s968_s11 }
  0x6b   : > { %s229_s12 = scalar_lea.sflag [#allocation6], %s228_s7 }
  0x6c   : > { %1163 = dma.done.wait (%p1940_p9), %s229_s12, 256  }
  0x6d   : > { %1165 = vsyncadd (%p1940_p9), %s229_s12, 4294967040  ;;  %v284_v0 = vlaneseq  ;;  %v295_v4 = vld [vmem:[%s232_s5] sm:$0xff]  ;;  %v454_v35 = vld [vmem:[%s1394_s26 + $0x30] sm:$0xff]  ;;  %s241_s22 = scalar_lea.vmem [#allocation7], %s968_s11  ;;  %p274_p11 = scmp.lt.s32.totalorder %s1180_s15, 1 }
  0x6e   : > { %v448_v25 = vld [vmem:[%s1394_s26] sm:$0xff]  ;;  %v453_v32 = vld [vmem:[%s1394_s26 + $0x28] sm:$0xff]  ;;  %v450_v36 = vld [vmem:[%s1394_s26 + $0x10] sm:$0xff] }
  0x6f   : > { %v1409_v1 = vshrl.u32 %v284_v0, 7  ;;  %v1419_v19 = vand.u32 127, %v284_v0  ;;  %v452_v26 = vld [vmem:[%s1394_s26 + $0x20] sm:$0xff]  ;;  %v449_v34 = vld [vmem:[%s1394_s26 + $0x8] sm:$0xff]  ;;  %v451_v47 = vld [vmem:[%s1394_s26 + $0x18] sm:$0xff]  ;;  %s1990_s15 = smov (!%p274_p11, %s1180_s15), 1 }
  0x70   : > { %v458_v57 = vld [vmem:[%s1394_s26 + $0x50] sm:$0xff]  ;;  %v456_v62 = vld [vmem:[%s1394_s26 + $0x40] sm:$0xff]  ;;  %v457_v30 = vld [vmem:[%s1394_s26 + $0x48] sm:$0xff]  ;;  %s276_s4 = scalar_lea.vmem %s1930_s3, %s1990_s15 }
  0x71   : > { %v309_v2 = vsub.s32 1, %v1409_v1  ;;  %v298_v3 = vsub.s32 0, %v1409_v1  ;;  %v320_v7 = vsub.s32 2, %v1409_v1  ;;  %v331_v9 = vsub.s32 3, %v1409_v1 }
  0x72   : > { %v342_v11 = vsub.s32 4, %v1409_v1  ;;  %v353_v13 = vsub.s32 5, %v1409_v1  ;;  %v364_v15 = vsub.s32 6, %v1409_v1  ;;  %v375_v17 = vsub.s32 7, %v1409_v1 }
  0x73   : > { %v310_v5 = vrot.slane %v295_v4, %v309_v2  ;;  %v299_v6 = vrot.slane %v295_v4, %v298_v3  ;;  %v321_v8 = vrot.slane %v295_v4, %v320_v7  ;;  %v332_v10 = vrot.slane %v295_v4, %v331_v9  ;;  %v462_v3 = vld [vmem:[%s1394_s26 + $0x70] sm:$0xff]  ;;  %v455_v9 = vld [vmem:[%s1394_s26 + $0x38] sm:$0xff] }
  0x74   : > { %v343_v12 = vrot.slane %v295_v4, %v342_v11  ;;  %v354_v14 = vrot.slane %v295_v4, %v353_v13  ;;  %v365_v16 = vrot.slane %v295_v4, %v364_v15  ;;  %v376_v18 = vrot.slane %v295_v4, %v375_v17 }
  0x75   : > { %312 = vbcast.lane.b32.xlu1 %v310_v5, 256  ;;  %301 = vbcast.lane.b32.xlu0 %v299_v6, 256  ;;  %v1422_v20 = vadd.s32 128, %v1419_v19  ;;  %v1425_v21 = vadd.s32 256, %v1419_v19  ;;  %v1428_v22 = vadd.s32 384, %v1419_v19 }
  0x79   : > { %316 = vbcast.lane.b32.xlu1 %v310_v5, 264  ;;  %305 = vbcast.lane.b32.xlu0 %v299_v6, 264 }
  0x7d   : > { %327 = vbcast.lane.b32.xlu1 %v321_v8, 264  ;;  %323 = vbcast.lane.b32.xlu0 %v321_v8, 256 }
  0x81   : > { %338 = vbcast.lane.b32.xlu1 %v332_v10, 264  ;;  %334 = vbcast.lane.b32.xlu0 %v332_v10, 256 }
  0x85   : > { %349 = vbcast.lane.b32.xlu1 %v343_v12, 264  ;;  %345 = vbcast.lane.b32.xlu0 %v343_v12, 256  ;;  %v460_v12 = vld [vmem:[%s1394_s26 + $0x60] sm:$0xff] }
  0x89   : > { %360 = vbcast.lane.b32.xlu1 %v354_v14, 264  ;;  %356 = vbcast.lane.b32.xlu0 %v354_v14, 256 }
  0x8d   : > { %371 = vbcast.lane.b32.xlu1 %v365_v16, 264  ;;  %367 = vbcast.lane.b32.xlu0 %v365_v16, 256 }
  0x91   : > { %382 = vbcast.lane.b32.xlu1 %v376_v18, 264  ;;  %378 = vbcast.lane.b32.xlu0 %v376_v18, 256 }
  0xe7   : > { %v313_v23 = vpop.permute.xlu1 %312  ;;  %v302_v24 = vpop.permute.xlu0 %301 }
  0xe8   : > { %vm392_vm0 = vcmp.eq.s32.totalorder %v1419_v19, %v313_v23  ;;  %vm393_vm1 = vcmp.eq.s32.totalorder %v1422_v20, %v313_v23  ;;  %vm394_vm2 = vcmp.eq.s32.totalorder %v1425_v21, %v313_v23  ;;  %vm395_vm3 = vcmp.eq.s32.totalorder %v1428_v22, %v313_v23 }
  0xe9   : > { %vm484_vm4 = vmpackc.low %vm393_vm1, %vm392_vm0  ;;  %vm384_vm5 = vcmp.eq.s32.totalorder %v1419_v19, %v302_v24  ;;  %vm385_vm6 = vcmp.eq.s32.totalorder %v1422_v20, %v302_v24  ;;  %vm386_vm7 = vcmp.eq.s32.totalorder %v1425_v21, %v302_v24  ;;  %vm387_vm8 = vcmp.eq.s32.totalorder %v1428_v22, %v302_v24  ;;  %v466_v24 = vld [vmem:[%s1394_s26 + $0x90] sm:$0xff] }
  0xea   : > { %vm480_vm9 = vmpackc.low %vm385_vm6, %vm384_vm5  ;;  %v516_v31 = vsel %vm484_vm4, %v452_v26, 0 }
  0xeb   : > { %v512_v27 = vsel %vm480_vm9, %v448_v25, 0  ;;  %v317_v28 = vpop.permute.xlu1 %316  ;;  %v306_v29 = vpop.permute.xlu0 %305  ;;  %vm1440_vm10 = vmpackc.low %vm387_vm8, %vm386_vm7  ;;  %v552_v42 = vunpack.c.l.bf16 %v516_v31  ;;  %v553_v43 = vunpack.c.h.bf16 %v516_v31 }
  0xec   : > { %vm396_vm11 = vcmp.eq.s32.totalorder %v1419_v19, %v317_v28  ;;  %vm397_vm12 = vcmp.eq.s32.totalorder %v1422_v20, %v317_v28  ;;  %vm485_vm13 = vmpackc.low %vm395_vm3, %vm394_vm2  ;;  %vm388_vm15 = vcmp.eq.s32.totalorder %v1419_v19, %v306_v29  ;;  %vm389_vm0 = vcmp.eq.s32.totalorder %v1422_v20, %v306_v29 }
  0xed   : > { %vm1451_vm14 = vmpackc.low %vm397_vm12, %vm396_vm11  ;;  %vm390_vm1 = vcmp.eq.s32.totalorder %v1425_v21, %v306_v29  ;;  %vm391_vm4 = vcmp.eq.s32.totalorder %v1428_v22, %v306_v29  ;;  %v544_v37 = vunpack.c.l.bf16 %v512_v27  ;;  %v545_v38 = vunpack.c.h.bf16 %v512_v27 }
  0xee   : > { %vm482_vm5 = vmpackc.low %vm389_vm0, %vm388_vm15  ;;  %v517_v41 = vsel %vm485_vm13, %v453_v32, 0  ;;  %v513_v44 = vsel %vm1440_vm10, %v449_v34, 0  ;;  %vm398_vm2 = vcmp.eq.s32.totalorder %v1425_v21, %v317_v28  ;;  %vm399_vm3 = vcmp.eq.s32.totalorder %v1428_v22, %v317_v28 }
  0xef   : > { %v1462_v39 = vpop.permute.xlu1 %327  ;;  %v1464_v40 = vpop.permute.xlu0 %323  ;;  %v1472_v45 = vsel %vm1451_vm14, %v454_v35, 0  ;;  %v514_v46 = vsel %vm482_vm5, %v450_v36, 0  ;;  %vm483_vm6 = vmpackc.low %vm391_vm4, %vm390_vm1  ;;  %v608_v48 = vadd.f32 %v545_v38, %v544_v37  ;;  %v554_v49 = vunpack.c.l.bf16 %v517_v41 }
  0xf0   : > { %vm404_vm7 = vcmp.eq.s32.totalorder %v1419_v19, %v1462_v39  ;;  %vm405_vm8 = vcmp.eq.s32.totalorder %v1422_v20, %v1462_v39  ;;  %vm400_vm9 = vcmp.eq.s32.totalorder %v1419_v19, %v1464_v40  ;;  %vm401_vm10 = vcmp.eq.s32.totalorder %v1422_v20, %v1464_v40  ;;  %vm1499_vm13 = vmpackc.low %vm399_vm3, %vm398_vm2 }
  0xf1   : > { %v546_v51 = vunpack.c.l.bf16 %v513_v44  ;;  %v618_v53 = vadd.f32 %v553_v43, %v552_v42  ;;  %v547_v54 = vunpack.c.h.bf16 %v513_v44  ;;  %v515_v55 = vsel %vm483_vm6, %v451_v47, 0  ;;  %vm1512_vm15 = vmpackc.low %vm405_vm8, %vm404_vm7  ;;  %v470_v44 = vld [vmem:[%s1394_s26 + $0xb0] sm:$0xff] }
  0xf2   : > { %vm406_vm14 = vcmp.eq.s32.totalorder %v1425_v21, %v1462_v39  ;;  %v555_v60 = vunpack.c.h.bf16 %v517_v41  ;;  %v548_v61 = vunpack.c.l.bf16 %v514_v46  ;;  %vm1523_vm0 = vmpackc.low %vm401_vm10, %vm400_vm9  ;;  %v549_v2 = vunpack.c.h.bf16 %v514_v46 }
  0xf3   : > { %v1487_v50 = vpop.permute.xlu1 %338  ;;  %v1489_v52 = vpop.permute.xlu0 %334  ;;  %v609_v59 = vadd.f32 %v608_v48, %v546_v51  ;;  %v619_v0 = vadd.f32 %v618_v53, %v554_v49  ;;  %vm402_vm5 = vcmp.eq.s32.totalorder %v1425_v21, %v1464_v40  ;;  %vm403_vm2 = vcmp.eq.s32.totalorder %v1428_v22, %v1464_v40  ;;  %v464_v40 = vld [vmem:[%s1394_s26 + $0x80] sm:$0xff]  ;;  %v459_v49 = vld [vmem:[%s1394_s26 + $0x58] sm:$0xff] }
  0xf4   : > { %vm412_vm11 = vcmp.eq.s32.totalorder %v1419_v19, %v1487_v50  ;;  %vm413_vm12 = vcmp.eq.s32.totalorder %v1422_v20, %v1487_v50  ;;  %vm408_vm1 = vcmp.eq.s32.totalorder %v1419_v19, %v1489_v52  ;;  %vm409_vm4 = vcmp.eq.s32.totalorder %v1422_v20, %v1489_v52 }
  0xf5   : > { %vm1542_vm3 = vmpackc.low %vm413_vm12, %vm412_vm11  ;;  %v610_v5 = vadd.f32 %v609_v59, %v547_v54  ;;  %v550_v7 = vunpack.c.l.bf16 %v515_v55  ;;  %vm407_vm6 = vcmp.eq.s32.totalorder %v1428_v22, %v1462_v39  ;;  %v1555_v10 = vsel %vm1512_vm15, %v458_v57, 0  ;;  %v468_v57 = vld [vmem:[%s1394_s26 + $0xa0] sm:$0xff] }
  0xf6   : > { %v520_v11 = vsel %vm1523_vm0, %v456_v62, 0  ;;  %vm410_vm9 = vcmp.eq.s32.totalorder %v1425_v21, %v1489_v52  ;;  %vm1572_vm10 = vmpackc.low %vm409_vm4, %vm408_vm1  ;;  %v551_v14 = vunpack.c.h.bf16 %v515_v55  ;;  %v613_v15 = vadd.f32 %v549_v2, %v548_v61  ;;  %v474_v62 = vld [vmem:[%s1394_s26 + $0xd0] sm:$0xff] }
  0xf7   : > { %v1546_v6 = vpop.permute.xlu1 %349  ;;  %v1548_v8 = vpop.permute.xlu0 %345  ;;  %611 = vadd.xlane.f32.xlu0 %v610_v5  ;;  %vm414_vm11 = vcmp.eq.s32.totalorder %v1425_v21, %v1487_v50  ;;  %vm415_vm12 = vcmp.eq.s32.totalorder %v1428_v22, %v1487_v50  ;;  %v1582_v16 = vsel %vm1542_vm3, %v462_v3, 0  ;;  %v620_v17 = vadd.f32 %v619_v0, %v555_v60  ;;  %vm1594_vm0 = vmpackc.low %vm403_vm2, %vm402_vm5 }
  0xf8   : > { %vm420_vm7 = vcmp.eq.s32.totalorder %v1419_v19, %v1546_v6  ;;  %vm421_vm8 = vcmp.eq.s32.totalorder %v1422_v20, %v1546_v6  ;;  %vm416_vm15 = vcmp.eq.s32.totalorder %v1419_v19, %v1548_v8  ;;  %v519_v18 = vsel %vm1499_vm13, %v455_v9, 0  ;;  %vm1634_vm3 = vmpackc.low %vm407_vm6, %vm406_vm14 }
  0xf9   : > { %vm1605_vm1 = vmpackc.low %vm421_vm8, %vm420_vm7  ;;  %v614_v26 = vadd.f32 %v613_v15, %v550_v7  ;;  %vm417_vm13 = vcmp.eq.s32.totalorder %v1422_v20, %v1548_v8  ;;  %v556_v28 = vunpack.c.l.bf16 %v1472_v45  ;;  %v557_v29 = vunpack.c.h.bf16 %v1472_v45 }
  0xfa   : > { %vm411_vm4 = vcmp.eq.s32.totalorder %v1428_v22, %v1489_v52  ;;  %v1620_v31 = vsel %vm1572_vm10, %v460_v12, 0  ;;  %v558_v34 = vunpack.c.l.bf16 %v519_v18  ;;  %v559_v35 = vunpack.c.h.bf16 %v519_v18  ;;  %vm1649_vm7 = vmpackc.low %vm417_vm13, %vm416_vm15  ;;  %v461_v52 = vld [vmem:[%s1394_s26 + $0x68] sm:$0xff]  ;;  %v463_v18 = vld [vmem:[%s1394_s26 + $0x78] sm:$0xff] }
  0xfb   : > { %v1611_v27 = vpop.permute.xlu1 %360  ;;  %v1626_v32 = vpop.permute.xlu0 %356  ;;  %621 = vadd.xlane.f32.xlu0 %v620_v17  ;;  %v615_v33 = vadd.f32 %v614_v26, %v551_v14  ;;  %v623_v36 = vadd.f32 %v557_v29, %v556_v28  ;;  %v1640_v38 = vsel %vm1605_vm1, %v466_v24, 0  ;;  %v521_v39 = vsel %vm1594_vm0, %v457_v30, 0  ;;  %vm1687_vm13 = vmpackc.low %vm411_vm4, %vm410_vm9  ;;  %v472_v17 = vld [vmem:[%s1394_s26 + $0xc0] sm:$0xff]  ;;  %v478_v26 = vld [vmem:[%s1394_s26 + $0xf0] sm:$0xff] }
  0xfc   : > { %vm428_vm5 = vcmp.eq.s32.totalorder %v1419_v19, %v1611_v27  ;;  %vm429_vm2 = vcmp.eq.s32.totalorder %v1422_v20, %v1611_v27  ;;  %v560_v42 = vunpack.c.l.bf16 %v520_v11  ;;  %v561_v43 = vunpack.c.h.bf16 %v520_v11 }
  0xfd   : > { %vm422_vm14 = vcmp.eq.s32.totalorder %v1425_v21, %v1546_v6  ;;  %vm423_vm6 = vcmp.eq.s32.totalorder %v1428_v22, %v1546_v6  ;;  %616 = vadd.xlane.f32.xlu1 %v615_v33  ;;  %vm418_vm8 = vcmp.eq.s32.totalorder %v1425_v21, %v1548_v8  ;;  %vm1668_vm10 = vmpackc.low %vm429_vm2, %vm428_vm5  ;;  %v624_v46 = vadd.f32 %v623_v36, %v558_v34 }
  0xfe   : > { %v562_v47 = vunpack.c.l.bf16 %v521_v39  ;;  %vm424_vm15 = vcmp.eq.s32.totalorder %v1419_v19, %v1626_v32  ;;  %vm419_vm0 = vcmp.eq.s32.totalorder %v1428_v22, %v1548_v8  ;;  %v563_v51 = vunpack.c.h.bf16 %v521_v39  ;;  %v465_v8 = vld [vmem:[%s1394_s26 + $0x88] sm:$0xff] }
  0xff   : > { %v1674_v48 = vpop.permute.xlu1 %371  ;;  %v628_v53 = vadd.f32 %v561_v43, %v560_v42  ;;  %vm425_vm1 = vcmp.eq.s32.totalorder %v1422_v20, %v1626_v32  ;;  %v1693_v55 = vsel %vm1649_vm7, %v464_v40, 0  ;;  %v625_v56 = vadd.f32 %v624_v46, %v559_v35  ;;  %v1726_v4 = vpop.permute.xlu0 %367  ;;  %v467_v43 = vld [vmem:[%s1394_s26 + $0x98] sm:$0xff] }
 0x100   : > { %vm1696_vm5 = vmpackc.low %vm425_vm1, %vm424_vm15  ;;  %vm436_vm2 = vcmp.eq.s32.totalorder %v1419_v19, %v1674_v48  ;;  %vm437_vm9 = vcmp.eq.s32.totalorder %v1422_v20, %v1674_v48  ;;  %v1707_v59 = vsel %vm1668_vm10, %v470_v44, 0  ;;  %vm426_vm4 = vcmp.eq.s32.totalorder %v1425_v21, %v1626_v32 }
 0x101   : > { %v629_v60 = vadd.f32 %v628_v53, %v562_v47  ;;  %v523_v61 = vsel %vm1634_vm3, %v459_v49, 0  ;;  %vm430_vm7 = vcmp.eq.s32.totalorder %v1425_v21, %v1611_v27  ;;  %626 = vadd.xlane.f32.xlu0 %v625_v56  ;;  %vm427_vm1 = vcmp.eq.s32.totalorder %v1428_v22, %v1626_v32  ;;  %vm1720_vm10 = vmpackc.low %vm437_vm9, %vm436_vm2  ;;  %v476_v49 = vld [vmem:[%s1394_s26 + $0xe0] sm:$0xff]  ;;  %v469_v53 = vld [vmem:[%s1394_s26 + $0xa8] sm:$0xff] }
 0x102   : > { %v564_v0 = vunpack.c.l.bf16 %v1555_v10  ;;  %v565_v2 = vunpack.c.h.bf16 %v1555_v10  ;;  %v566_v3 = vunpack.c.l.bf16 %v523_v61  ;;  %v1730_v7 = vsel %vm1696_vm5, %v468_v57, 0  ;;  %vm1746_vm3 = vmpackc.low %vm415_vm12, %vm414_vm11 }
 0x103   : > { %v630_v5 = vadd.f32 %v629_v60, %v563_v51  ;;  %v525_v9 = vsel %vm1687_vm13, %v461_v52, 0  ;;  %v568_v11 = vunpack.c.l.bf16 %v1620_v31  ;;  %v1735_v12 = vpop.permute.xlu1 %382  ;;  %v567_v13 = vunpack.c.h.bf16 %v523_v61  ;;  %vm1765_vm11 = vmpackc.low %vm419_vm0, %vm418_vm8  ;;  %v1789_v37 = vpop.permute.xlu0 %378  ;;  %v471_v52 = vld [vmem:[%s1394_s26 + $0xb8] sm:$0xff] }
 0x104   : > { %v633_v14 = vadd.f32 %v565_v2, %v564_v0  ;;  %v569_v10 = vunpack.c.h.bf16 %v1620_v31  ;;  %v570_v15 = vunpack.c.l.bf16 %v525_v9  ;;  %v1752_v24 = vsel %vm1720_vm10, %v474_v62, 0 }
 0x105   : > { %631 = vadd.xlane.f32.xlu1 %v630_v5  ;;  %v571_v25 = vunpack.c.h.bf16 %v525_v9  ;;  %vm432_vm13 = vcmp.eq.s32.totalorder %v1419_v19, %v1726_v4  ;;  %vm433_vm5 = vcmp.eq.s32.totalorder %v1422_v20, %v1726_v4  ;;  %vm438_vm12 = vcmp.eq.s32.totalorder %v1425_v21, %v1674_v48  ;;  %v473_v5 = vld [vmem:[%s1394_s26 + $0xc8] sm:$0xff] }
 0x106   : > { %v634_v28 = vadd.f32 %v633_v14, %v566_v3  ;;  %v638_v29 = vadd.f32 %v569_v10, %v568_v11  ;;  %vm504_vm9 = vmpackc.low %vm433_vm5, %vm432_vm13  ;;  %vm444_vm10 = vcmp.eq.s32.totalorder %v1419_v19, %v1735_v12  ;;  %vm445_vm15 = vcmp.eq.s32.totalorder %v1422_v20, %v1735_v12 }
 0x107   : > { %vm434_vm8 = vcmp.eq.s32.totalorder %v1425_v21, %v1726_v4  ;;  %vm435_vm0 = vcmp.eq.s32.totalorder %v1428_v22, %v1726_v4  ;;  %v1782_v30 = vsel %vm504_vm9, %v472_v17, 0  ;;  %vm510_vm2 = vmpackc.low %vm445_vm15, %vm444_vm10  ;;  %v527_v31 = vsel %vm1746_vm3, %v463_v18, 0  ;;  %v475_v17 = vld [vmem:[%s1394_s26 + $0xd8] sm:$0xff] }
 0x108   : > { %v635_v33 = vadd.f32 %v634_v28, %v567_v13  ;;  %v639_v34 = vadd.f32 %v638_v29, %v570_v15  ;;  %v1786_v35 = vsel %vm510_vm2, %v478_v26, 0  ;;  %v572_v36 = vunpack.c.l.bf16 %v1582_v16  ;;  %vm1801_vm15 = vmpackc.low %vm423_vm6, %vm422_vm14  ;;  %v477_v29 = vld [vmem:[%s1394_s26 + $0xe8] sm:$0xff] }
 0x109   : > { %v573_v40 = vunpack.c.h.bf16 %v1582_v16  ;;  %v574_v41 = vunpack.c.l.bf16 %v527_v31  ;;  %v575_v39 = vunpack.c.h.bf16 %v527_v31  ;;  %v529_v42 = vsel %vm1765_vm11, %v465_v8, 0  ;;  %vm1823_vm5 = vmpackc.low %vm427_vm1, %vm426_vm4 }
 0x10a   : > { %636 = vadd.xlane.f32.xlu0 %v635_v33  ;;  %v640_v45 = vadd.f32 %v639_v34, %v571_v25  ;;  %vm446_vm3 = vcmp.eq.s32.totalorder %v1425_v21, %v1735_v12  ;;  %vm447_vm13 = vcmp.eq.s32.totalorder %v1428_v22, %v1735_v12  ;;  %v576_v16 = vunpack.c.l.bf16 %v1693_v55 }
 0x10b   : > { %v577_v46 = vunpack.c.h.bf16 %v1693_v55  ;;  %v578_v47 = vunpack.c.l.bf16 %v529_v42  ;;  %v643_v51 = vadd.f32 %v573_v40, %v572_v36  ;;  %v579_v6 = vunpack.c.h.bf16 %v529_v42 }
 0x10c   : > { %vm440_vm14 = vcmp.eq.s32.totalorder %v1419_v19, %v1789_v37  ;;  %vm441_vm6 = vcmp.eq.s32.totalorder %v1422_v20, %v1789_v37  ;;  %641 = vadd.xlane.f32.xlu1 %v640_v45  ;;  %vm442_vm11 = vcmp.eq.s32.totalorder %v1425_v21, %v1789_v37  ;;  %vm443_vm2 = vcmp.eq.s32.totalorder %v1428_v22, %v1789_v37 }
 0x10d   : > { %v648_v55 = vadd.f32 %v577_v46, %v576_v16  ;;  %vm508_vm9 = vmpackc.low %vm441_vm6, %vm440_vm14  ;;  %v531_v20 = vsel %vm1801_vm15, %v467_v43, 0  ;;  %v644_v56 = vadd.f32 %v643_v51, %v574_v41  ;;  %v580_v32 = vunpack.c.l.bf16 %v1640_v38 }
 0x10e   : > { %v1833_v57 = vsel %vm508_vm9, %v476_v49, 0  ;;  %v581_v58 = vunpack.c.h.bf16 %v1640_v38  ;;  %vm1980_vm4 = vcmp.eq.s32.totalorder %v1428_v22, %v1611_v27  ;;  %v582_v61 = vunpack.c.l.bf16 %v531_v20 }
 0x10f   : > { %vm503_vm1 = vmpackc.low %vm1980_vm4, %vm430_vm7  ;;  %v649_v60 = vadd.f32 %v648_v55, %v578_v47  ;;  %v583_v62 = vunpack.c.h.bf16 %v531_v20  ;;  %v533_v63 = vsel %vm1823_vm5, %v469_v53, 0  ;;  %v645_v0 = vadd.f32 %v644_v56, %v575_v39 }
 0x110   : > { %v653_v2 = vadd.f32 %v581_v58, %v580_v32  ;;  %v584_v3 = vunpack.c.l.bf16 %v1730_v7  ;;  %v585_v38 = vunpack.c.h.bf16 %v1730_v7  ;;  %vm505_vm7 = vmpackc.low %vm435_vm0, %vm434_vm8  ;;  %v586_v9 = vunpack.c.l.bf16 %v533_v63 }
 0x111   : > { %v650_v27 = vadd.f32 %v649_v60, %v579_v6  ;;  %v587_v11 = vunpack.c.h.bf16 %v533_v63  ;;  %v535_v13 = vsel %vm503_vm1, %v471_v52, 0  ;;  %646 = vadd.xlane.f32.xlu0 %v645_v0  ;;  %v588_v15 = vunpack.c.l.bf16 %v1707_v59  ;;  %vm511_vm0 = vmpackc.low %vm447_vm13, %vm446_vm3 }
 0x112   : > { %v654_v14 = vadd.f32 %v653_v2, %v582_v61  ;;  %v658_v10 = vadd.f32 %v585_v38, %v584_v3  ;;  %v589_v7 = vunpack.c.h.bf16 %v1707_v59  ;;  %vm1981_vm10 = vcmp.eq.s32.totalorder %v1428_v22, %v1674_v48 }
 0x113   : > { %vm507_vm8 = vmpackc.low %vm1981_vm10, %vm438_vm12  ;;  %651 = vadd.xlane.f32.xlu1 %v650_v27  ;;  %v590_v4 = vunpack.c.l.bf16 %v535_v13  ;;  %v591_v18 = vunpack.c.h.bf16 %v535_v13  ;;  %v537_v23 = vsel %vm505_vm7, %v473_v5, 0  ;;  %v592_v25 = vunpack.c.l.bf16 %v1782_v30 }
 0x114   : > { %v655_v26 = vadd.f32 %v654_v14, %v583_v62  ;;  %v659_v50 = vadd.f32 %v658_v10, %v586_v9  ;;  %v663_v28 = vadd.f32 %v589_v7, %v588_v15  ;;  %v593_v59 = vunpack.c.h.bf16 %v1782_v30  ;;  %vm509_vm12 = vmpackc.low %vm443_vm2, %vm442_vm11  ;;  %v479_v30 = vld [vmem:[%s1394_s26 + $0xf8] sm:$0xff] }
 0x115   : > { %v594_v48 = vunpack.c.l.bf16 %v537_v23  ;;  %v595_v8 = vunpack.c.h.bf16 %v537_v23  ;;  %v539_v31 = vsel %vm507_vm8, %v475_v17, 0  ;;  %v596_v33 = vunpack.c.l.bf16 %v1752_v24 }
 0x116   : > { %656 = vadd.xlane.f32.xlu0 %v655_v26  ;;  %v660_v34 = vadd.f32 %v659_v50, %v587_v11  ;;  %v664_v36 = vadd.f32 %v663_v28, %v590_v4  ;;  %v668_v40 = vadd.f32 %v593_v59, %v592_v25  ;;  %v597_v41 = vunpack.c.h.bf16 %v1752_v24 }
 0x117   : > { %v598_v37 = vunpack.c.l.bf16 %v539_v31  ;;  %v599_v39 = vunpack.c.h.bf16 %v539_v31  ;;  %v541_v42 = vsel %vm509_vm12, %v477_v29, 0  ;;  %v600_v43 = vunpack.c.l.bf16 %v1833_v57 }
 0x118   : > { %661 = vadd.xlane.f32.xlu1 %v660_v34  ;;  %v665_v44 = vadd.f32 %v664_v36, %v591_v18  ;;  %v669_v45 = vadd.f32 %v668_v40, %v594_v48  ;;  %v673_v16 = vadd.f32 %v597_v41, %v596_v33  ;;  %v601_v46 = vunpack.c.h.bf16 %v1833_v57 }
 0x119   : > { %v602_v24 = vunpack.c.l.bf16 %v541_v42  ;;  %v603_v47 = vunpack.c.h.bf16 %v541_v42  ;;  %v543_v49 = vsel %vm511_vm0, %v479_v30, 0  ;;  %v604_v21 = vunpack.c.l.bf16 %v1786_v35 }
 0x11a   : > { %666 = vadd.xlane.f32.xlu0 %v665_v44  ;;  %v670_v51 = vadd.f32 %v669_v45, %v595_v8  ;;  %v674_v22 = vadd.f32 %v673_v16, %v598_v37  ;;  %v678_v12 = vadd.f32 %v601_v46, %v600_v43  ;;  %v605_v6 = vunpack.c.h.bf16 %v1786_v35 }
 0x11b   : > { %v606_v53 = vunpack.c.l.bf16 %v543_v49  ;;  %v607_v20 = vunpack.c.h.bf16 %v543_v49  ;;  %vm282_vm15 = vcmask 130048   ;;  %v1195_v52 = vmov 0.0  }
 0x11c   : > { %671 = vadd.xlane.f32.xlu1 %v670_v51  ;;  %v675_v54 = vadd.f32 %v674_v22, %v599_v39  ;;  %v679_v55 = vadd.f32 %v678_v12, %v602_v24  ;;  %v683_v56 = vadd.f32 %v605_v6, %v604_v21  ;;  %283 = vst.msk [vmem:[#allocation2] sm:$0xff] %vm282_vm15, %v1195_v52  ;;  %v733_v27 = vadd.s32 4294967288, %v1419_v19 }
 0x11d   : > { %v731_v4 = vsub.s32 %v1419_v19, %v1409_v1  ;;  %vm738_vm3 = vcmask 130112   ;;  %vm803_vm13 = vcmask 1041409   ;;  %vm805_vm14 = vcmask 1042434  }
 0x11e   : > { %676 = vadd.xlane.f32.xlu0 %v675_v54  ;;  %v680_v32 = vadd.f32 %v679_v55, %v603_v47  ;;  %v684_v57 = vadd.f32 %v683_v56, %v606_v53  ;;  %v736_v18 = vsub.s32 %v733_v27, %v1409_v1  ;;  %vm807_vm6 = vcmask 1043459  }
 0x11f   : > { %vm809_vm5 = vcmask 1044484   ;;  %vm811_vm11 = vcmask 1045509   ;;  %vm813_vm2 = vcmask 1046534   ;;  %vm815_vm9 = vcmask 1047559  }
 0x120   : > { %681 = vadd.xlane.f32.xlu1 %v680_v32  ;;  %v685_v58 = vadd.f32 %v684_v57, %v607_v20  ;;  %vm839_vm4 = vcmask 0  }
 0x122   : > { %686 = vadd.xlane.f32.xlu0 %v685_v58 }
 0x184   : > { %v612_v60 = vpop.xlane.xlu0 %611 }
 0x188   : > { %v622_v61 = vpop.xlane.xlu0 %621 }
 0x18a   : > { %v617_v62 = vpop.xlane.xlu1 %616 }
 0x18b   : > { %v688_v9 = vpack.c.bf16 %v617_v62, %v612_v60 }
 0x18d   : > { %v697_v23 = vunpack.c.l.bf16 %v688_v9  ;;  %v698_v25 = vunpack.c.h.bf16 %v688_v9 }
 0x18e   : > { %v627_v35 = vpop.xlane.xlu0 %626 }
 0x18f   : > { %v689_v5 = vpack.c.bf16 %v627_v35, %v622_v61  ;;  %v732_v30 = vrot.slane %v697_v23, %v731_v4  ;;  %v737_v37 = vrot.slane %v698_v25, %v736_v18 }
 0x191   : > { %v699_v10 = vunpack.c.l.bf16 %v689_v5  ;;  %v700_v15 = vunpack.c.h.bf16 %v689_v5  ;;  %v739_v51 = vsel %vm738_vm3, %v737_v37, %v732_v30 }
 0x192   : > { %v632_v63 = vpop.xlane.xlu1 %631 }
 0x193   : > { %v743_v8 = vrot.slane %v699_v10, %v731_v4  ;;  %v747_v31 = vrot.slane %v700_v15, %v736_v18 }
 0x195   : > { %v748_v45 = vsel %vm738_vm3, %v747_v31, %v743_v8 }
 0x196   : > { %v804_v56 = vsel %vm803_vm13, %v748_v45, %v739_v51 }
 0x197   : > { %v637_v0 = vpop.xlane.xlu0 %636 }
 0x198   : > { %v690_v11 = vpack.c.bf16 %v637_v0, %v632_v63 }
 0x199   : > { %v642_v2 = vpop.xlane.xlu1 %641 }
 0x19a   : > { %v701_v26 = vunpack.c.l.bf16 %v690_v11  ;;  %v702_v50 = vunpack.c.h.bf16 %v690_v11  ;;  %v825_v11 = vld [vmem:[%s241_s22] sm:$0xff] }
 0x19c   : > { %v752_v19 = vrot.slane %v701_v26, %v731_v4  ;;  %v756_v39 = vrot.slane %v702_v50, %v736_v18 }
 0x19e   : > { %v647_v3 = vpop.xlane.xlu0 %646  ;;  %v757_v22 = vsel %vm738_vm3, %v756_v39, %v752_v19 }
 0x19f   : > { %v691_v14 = vpack.c.bf16 %v647_v3, %v642_v2  ;;  %v806_v57 = vsel %vm805_vm14, %v757_v22, %v804_v56  ;;  %v696_v3 = vld [vmem:[#allocation2] sm:$0xff] }
 0x1a0   : > { %v652_v38 = vpop.xlane.xlu1 %651 }
 0x1a1   : > { %v703_v59 = vunpack.c.l.bf16 %v691_v14  ;;  %v704_v29 = vunpack.c.h.bf16 %v691_v14 }
 0x1a3   : > { %v657_v13 = vpop.xlane.xlu0 %656  ;;  %v761_v42 = vrot.slane %v703_v59, %v731_v4  ;;  %v765_v43 = vrot.slane %v704_v29, %v736_v18 }
 0x1a4   : > { %v692_v17 = vpack.c.bf16 %v657_v13, %v652_v38 }
 0x1a5   : > { %v662_v7 = vpop.xlane.xlu1 %661  ;;  %v766_v53 = vsel %vm738_vm3, %v765_v43, %v761_v42 }
 0x1a6   : > { %v705_v33 = vunpack.c.l.bf16 %v692_v17  ;;  %v706_v34 = vunpack.c.h.bf16 %v692_v17  ;;  %v808_v61 = vsel %vm807_vm6, %v766_v53, %v806_v57 }
 0x1a7   : > { %v667_v28 = vpop.xlane.xlu0 %666 }
 0x1a8   : > { %v693_v48 = vpack.c.bf16 %v667_v28, %v662_v7  ;;  %v770_v16 = vrot.slane %v705_v33, %v731_v4  ;;  %v774_v46 = vrot.slane %v706_v34, %v736_v18 }
 0x1a9   : > { %v672_v36 = vpop.xlane.xlu1 %671 }
 0x1aa   : > { %v707_v40 = vunpack.c.l.bf16 %v693_v48  ;;  %v708_v41 = vunpack.c.h.bf16 %v693_v48  ;;  %v775_v32 = vsel %vm738_vm3, %v774_v46, %v770_v16 }
 0x1ab   : > { %v677_v1 = vpop.xlane.xlu0 %676  ;;  %v810_v35 = vsel %vm809_vm5, %v775_v32, %v808_v61 }
 0x1ac   : > { %v694_v44 = vpack.c.bf16 %v677_v1, %v672_v36  ;;  %v779_v24 = vrot.slane %v707_v40, %v731_v4  ;;  %v783_v47 = vrot.slane %v708_v41, %v736_v18 }
 0x1ad   : > { %v682_v12 = vpop.xlane.xlu1 %681 }
 0x1ae   : > { %v709_v49 = vunpack.c.l.bf16 %v694_v44  ;;  %v710_v21 = vunpack.c.h.bf16 %v694_v44  ;;  %v784_v58 = vsel %vm738_vm3, %v783_v47, %v779_v24 }
 0x1af   : > { %v687_v6 = vpop.xlane.xlu0 %686  ;;  %v812_v2 = vsel %vm811_vm11, %v784_v58, %v810_v35 }
 0x1b0   : > { %v788_v54 = vrot.slane %v709_v49, %v731_v4  ;;  %v792_v55 = vrot.slane %v710_v21, %v736_v18  ;;  %v695_v20 = vpack.c.bf16 %v687_v6, %v682_v12 }
 0x1b2   : > { %v711_v52 = vunpack.c.l.bf16 %v695_v20  ;;  %v712_v60 = vunpack.c.h.bf16 %v695_v20  ;;  %v793_v62 = vsel %vm738_vm3, %v792_v55, %v788_v54 }
 0x1b3   : > { %v814_v38 = vsel %vm813_vm2, %v793_v62, %v812_v2 }
 0x1b4   : > { %v797_v63 = vrot.slane %v711_v52, %v731_v4  ;;  %v801_v0 = vrot.slane %v712_v60, %v736_v18 }
 0x1b6   : > { %v802_v5 = vsel %vm738_vm3, %v801_v0, %v797_v63 }
 0x1b7   : > { %v816_v27 = vsel %vm815_vm9, %v802_v5, %v814_v38 }
 0x1b8   : > { %v818_v9 = vadd.f32 %v816_v27, %v696_v3 }
 0x1ba   : > { %820 = vst.msk [vmem:[#allocation2] sm:$0xff] %vm282_vm15, %v818_v9 }
 0x1c1   : > { %v824_v13 = vld [vmem:[#allocation2] sm:$0xff] }
 0x1c2   : > { %v826_v14 = vmul.f32 %v825_v11, %v824_v13 }
 0x1c4   : > { %v827_v10 = vsel %vm282_vm15, %v826_v14, 0.0 }
 0x1c5   : > { %828 = vadd.xlane.f32.xlu1 %v827_v10 }
 0x252   : > { %v829_v15 = vpop.xlane.xlu1 %828 }
 0x253   : > { %v830_v7 = vrot.slane %v829_v15, 4 }
 0x255   : > { %v831_v17 = vadd.f32 %v830_v7, %v829_v15 }
 0x257   : > { %v832_v4 = vrot.slane %v831_v17, 2 }
 0x259   : > { %v833_v18 = vadd.f32 %v832_v4, %v831_v17 }
 0x25b   : > { %v834_v23 = vrot.slane %v833_v18, 1 }
 0x25d   : > { %v835_v25 = vadd.f32 %v834_v23, %v833_v18 }
 0x25f   : > { %974 = vpush %v835_v25 }
 0x290   : > { %s975_s29 = spop %974 }
 0x291   : > { %v837_v26 = vstv %s975_s29 }
 0x292   : > { %v838_v50 = vsub.f32 0.0, %v837_v26 }
 0x294   : > { %840 = vst.msk [vmem:[%s276_s4] sm:$0x1] %vm839_vm4, %v838_v50 }
 0x295 PF: > { %s19_s17 = sadd.s32 1, %s1188_s17   ;;  %s1982_s12 = smov %s1172_s13 }
 0x296   : > { %p16_p1 = scmp.ge.s32.totalorder %s19_s17, 4   ;;  %s1983_s13 = smov %s1176_s14 }
 0x297   : > { %s1984_s14 = smov %s1263_s23  ;;  %s1985_s15 = smov %s1184_s16 }
 0x298   : > { %s1986_s16 = smov %s1988_s19  ;;  %18 = sbr.rel (!%p16_p1) target bundleno = 6 (0x6), region = 104 }
 0x29f   :  { %858 = vsyncpa [#allocation4], 1 }
 0x2a0   :  { %860 = vsyncpa [#allocation4 + $0x1], 1 }
 0x2a1   :  { %861 = vsyncpa [#allocation6], 1 }
 0x2a2   :  { %863 = vsyncpa [#allocation6 + $0x1], 1 }

</bundles_post_ra>
